<compile_context>
chip_gen: v6e
topology: v6e:2x2x1
jax: 0.10.0
libtpu: 0.0.40
codegen_flags: <defaults>
</compile_context>

<pallas_src>
import math
import functools

import jax
import jax.numpy as jnp
import numpy as np
from jax.experimental import pallas as pl
from jax.experimental.pallas import tpu as pltpu


_SQRT_2_OVER_PI = math.sqrt(2.0 / math.pi)


def _gelu_new(x):
    # 0.5 * x * (1 + tanh(sqrt(2/pi) * (x + 0.044715 * x^3)))
    return 0.5 * x * (1.0 + jnp.tanh(_SQRT_2_OVER_PI * (x + 0.044715 * x * x * x)))


def _round_up(x, m):
    return ((x + m - 1) // m) * m


def _itemsize(dt):
    return jnp.dtype(dt).itemsize


def _vmem_budget_bytes():
    # ~75% of physical VMEM: ~48 MiB on v7x (64 MiB), ~96 MiB on v5e/v6e (128 MiB).
    cap = 0
    try:
        info = pltpu.get_tpu_info()
        cap = int(getattr(info, "vmem_capacity_bytes", 0) or 0)
    except Exception:
        cap = 0
    if cap <= 0:
        cap = 64 * 1024 * 1024  # conservative (v7x-sized) fallback
    return (cap * 3) // 4


# ------------------------- Resident-weights kernel (preferred) -------------------------
def _ffn_resident_kernel(x_ref, w1_ref, b1_ref, w2_ref, b2_ref, out_ref):
    # W1/W2/b1/b2 have constant index_maps -> DMA'd once, reused for every row block.
    h = jnp.dot(x_ref[...], w1_ref[...], preferred_element_type=jnp.float32)
    h = _gelu_new(h + b1_ref[...].astype(jnp.float32))
    out = jnp.dot(h.astype(w2_ref.dtype), w2_ref[...],
                  preferred_element_type=jnp.float32)
    out_ref[...] = (out + b2_ref[...].astype(jnp.float32)).astype(out_ref.dtype)


def _call_resident(x, w1, b1, w2, b2, *, tm, out_dtype, vmem_limit):
    R, H = x.shape
    I = w1.shape[1]
    H_out = w2.shape[1]
    grid = (R // tm,)

    nbytes = lambda a: a.size * _itemsize(a.dtype)
    cost = pl.CostEstimate(
        flops=2 * R * H * I + 2 * R * I * H_out,
        transcendentals=R * I,
        bytes_accessed=(nbytes(x) + nbytes(w1) + nbytes(w2) + nbytes(b1)
                        + nbytes(b2) + R * H_out * _itemsize(out_dtype)),
    )

    return pl.pallas_call(
        _ffn_resident_kernel,
        out_shape=jax.ShapeDtypeStruct((R, H_out), out_dtype),
        grid_spec=pltpu.PrefetchScalarGridSpec(
            num_scalar_prefetch=0,
            grid=grid,
            in_specs=[
                pl.BlockSpec((tm, H), lambda i: (i, 0)),       # x row tile
                pl.BlockSpec((H, I), lambda i: (0, 0)),        # W1 (VMEM-resident)
                pl.BlockSpec((1, I), lambda i: (0, 0)),        # b1 (resident)
                pl.BlockSpec((I, H_out), lambda i: (0, 0)),    # W2 (resident)
                pl.BlockSpec((1, H_out), lambda i: (0, 0)),    # b2 (resident)
            ],
            out_specs=pl.BlockSpec((tm, H_out), lambda i: (i, 0)),
        ),
        compiler_params=pltpu.CompilerParams(
            dimension_semantics=("parallel",),
            vmem_limit_bytes=int(vmem_limit),
        ),
        cost_estimate=cost,
    )(x, w1, b1, w2, b2)


# ------------------------ Streaming (chunked-I) fallback kernel ------------------------
def _ffn_stream_kernel(x_ref, w1_ref, b1_ref, w2_ref, b2_ref, out_ref, acc_ref, *, ti):
    k = pl.program_id(1)

    @pl.when(k == 0)
    def _():
        # Initialize the accumulator with b2 (drops the separate final add pass).
        acc_ref[...] = jnp.broadcast_to(b2_ref[...].astype(jnp.float32), acc_ref.shape)

    off = k * ti
    if ti % 128 == 0:
        off = pl.multiple_of(off, 128)

    # (tm, H) x (H, ti) -> (tm, ti), f32 accumulation on the MXU.
    h = jnp.dot(x_ref[...], w1_ref[...], preferred_element_type=jnp.float32)
    h = _gelu_new(h + b1_ref[:, pl.ds(off, ti)].astype(jnp.float32))

    # (tm, ti) x (ti, H_out) -> (tm, H_out), accumulated over k.
    acc_ref[...] += jnp.dot(h.astype(w2_ref.dtype), w2_ref[...],
                            preferred_element_type=jnp.float32)

    @pl.when(k == pl.num_programs(1) - 1)
    def _():
        out_ref[...] = acc_ref[...].astype(out_ref.dtype)


def _call_stream(x, w1, b1, w2, b2, *, tm, ti, out_dtype, vmem_limit):
    R, H = x.shape
    I = w1.shape[1]
    H_out = w2.shape[1]
    grid = (R // tm, I // ti)

    nbytes = lambda a: a.size * _itemsize(a.dtype)
    cost = pl.CostEstimate(
        flops=2 * R * H * I + 2 * R * I * H_out,
        transcendentals=R * I,
        bytes_accessed=(nbytes(x)
                        + grid[0] * (nbytes(w1) + nbytes(w2))   # re-streamed per row block
                        + nbytes(b1) + nbytes(b2)
                        + R * H_out * _itemsize(out_dtype)),
    )

    kernel = functools.partial(_ffn_stream_kernel, ti=ti)
    return pl.pallas_call(
        kernel,
        out_shape=jax.ShapeDtypeStruct((R, H_out), out_dtype),
        grid_spec=pltpu.PrefetchScalarGridSpec(
            num_scalar_prefetch=0,
            grid=grid,
            in_specs=[
                pl.BlockSpec((tm, H), lambda i, k: (i, 0)),      # x row tile
                pl.BlockSpec((H, ti), lambda i, k: (0, k)),      # W1 column chunk
                pl.BlockSpec((1, I), lambda i, k: (0, 0)),       # full b1, sliced in-kernel
                pl.BlockSpec((ti, H_out), lambda i, k: (k, 0)),  # W2 row chunk
                pl.BlockSpec((1, H_out), lambda i, k: (0, 0)),   # b2 (resident)
            ],
            out_specs=pl.BlockSpec((tm, H_out), lambda i, k: (i, 0)),
            scratch_shapes=[pltpu.VMEM((tm, H_out), jnp.float32)],
        ),
        compiler_params=pltpu.CompilerParams(
            dimension_semantics=("parallel", "arbitrary"),
            vmem_limit_bytes=int(vmem_limit),
        ),
        cost_estimate=cost,
    )(x, w1, b1, w2, b2)


# ---------------------------------------- Wrapper ----------------------------------------
def albert_intermediate(hidden_states, w1, b1, w2, b2, *, tm=None, ti=None,
                        out_dtype=None, weights_resident=None):
    """AlbertIntermediate.forward:
         out = gelu_new(x @ W1 + b1) @ W2 + b2   (AlbertOutput dropout = identity in eval).

    hidden_states: (..., H);  w1: (H, I);  b1: (I,) or (1, I);
    w2: (I, H_out);  b2: (H_out,) or (1, H_out).
    """
    if out_dtype is None:
        out_dtype = hidden_states.dtype
    out_dtype = jnp.dtype(out_dtype)

    # HF ALBERT checkpoints store 1-D biases; normalize to (1, N).
    b1 = b1.reshape(1, -1)
    b2 = b2.reshape(1, -1)

    lead_shape = hidden_states.shape[:-1]
    H = hidden_states.shape[-1]
    I = w1.shape[1]
    H_out = w2.shape[1]

    x = hidden_states.reshape(-1, H)
    R = x.shape[0]

    budget = _vmem_budget_bytes()
    margin = 4 << 20  # headroom for Mosaic internal scratch / temporaries

    w_bytes = (w1.size * _itemsize(w1.dtype) + w2.size * _itemsize(w2.dtype)
               + b1.size * _itemsize(b1.dtype) + b2.size * _itemsize(b2.dtype))
    # Per-row VMEM cost of a resident row block: double-buffered x/out,
    # the (tm, I) f32 intermediate and small f32 temporaries.
    res_per_row = (2 * H * _itemsize(x.dtype) + 2 * H_out * out_dtype.itemsize
                   + I * 4 + H_out * 4)

    if weights_resident is None:
        probe_rows = min(256, _round_up(R, 16))
        weights_resident = (2 * w_bytes + max(256, probe_rows) * res_per_row
                            + margin) <= budget

    if weights_resident:
        # ------------------------- resident-weights path -------------------------
        if tm is None:
            tm = (budget - margin - 2 * w_bytes) // max(res_per_row, 1)
            tm = max(256, min(2048, (tm // 256) * 256))
        if R >= 2 * 256:
            # Keep >=2 row blocks so both v7x TensorCores get work.
            tm = min(tm, _round_up((R + 1) // 2, 256))
        tm = max(16, min(tm, _round_up(R, 16)))

        R_pad = _round_up(R, tm)
        if R_pad != R:
            x = jnp.pad(x, ((0, R_pad - R), (0, 0)))

        out = _call_resident(x, w1, b1, w2, b2, tm=tm, out_dtype=out_dtype,
                             vmem_limit=budget)
    else:
        # --------------------------- streaming fallback ---------------------------
        def stream_vmem(tm_c, ti_c):
            return (2 * tm_c * H * _itemsize(x.dtype)
                    + 2 * H * ti_c * _itemsize(w1.dtype)
                    + 2 * ti_c * H_out * _itemsize(w2.dtype)
                    + 2 * _round_up(I, ti_c) * _itemsize(b1.dtype)
                    + 2 * H_out * _itemsize(b2.dtype)
                    + 2 * tm_c * H_out * out_dtype.itemsize
                    + tm_c * H_out * 4        # f32 accumulator scratch
                    + tm_c * ti_c * 4)        # f32 intermediate

        if tm is None or ti is None:
            tm_sel, ti_sel = None, None
            tm_cands = [2048, 1536, 1024, 768, 512, 384, 256, 128, 64, 32, 16]
            ti_cands = [1024, 512, 256, 128]
            for prefer_divisor in (True, False):
                for tm_c in tm_cands:
                    for ti_c in ti_cands:
                        if prefer_divisor and I % ti_c != 0:
                            continue
                        if stream_vmem(tm_c, ti_c) + margin <= budget:
                            tm_sel, ti_sel = tm_c, ti_c
                            break
                    if tm_sel is not None:
                        break
                if tm_sel is not None:
                    break
            if tm_sel is None:
                tm_sel, ti_sel = 16, 128  # last-resort tiny tiles
            tm = tm if tm is not None else tm_sel
            ti = ti if ti is not None else ti_sel

        ti = max(128, min(ti, _round_up(I, 128)))
        if R >= 2 * 256:
            tm = min(tm, _round_up((R + 1) // 2, 256))
        tm = max(16, min(tm, _round_up(R, 16)))

        R_pad = _round_up(R, tm)
        I_pad = _round_up(I, ti)
        if R_pad != R:
            x = jnp.pad(x, ((0, R_pad - R), (0, 0)))
        if I_pad != I:
            # Never taken for standard ALBERT sizes (ti candidates divide I).
            # TODO(synk): pad weights once at model-load time if I is ragged.
            w1 = jnp.pad(w1, ((0, 0), (0, I_pad - I)))
            b1 = jnp.pad(b1, ((0, 0), (0, I_pad - I)))
            w2 = jnp.pad(w2, ((0, I_pad - I), (0, 0)))

        out = _call_stream(x, w1, b1, w2, b2, tm=tm, ti=ti, out_dtype=out_dtype,
                           vmem_limit=budget)

    if out.shape[0] != R:
        out = out[:R]
    return out.reshape(lead_shape + (H_out,))


# --------------------------------------- Reference ---------------------------------------
def _reference(hidden_states, w1, b1, w2, b2):
    h = hidden_states @ w1 + b1
    h = _gelu_new(h)
    return h @ w2 + b2


if __name__ == "__main__":
    B, S = 2, 8
    hidden_size, intermediate_size = 32, 64

    key = jax.random.PRNGKey(0)
    ks = jax.random.split(key, 8)

    # AlbertIntermediate.dense : Linear(hidden -> intermediate); 1-D biases like nn.Linear.
    w1 = jax.random.normal(ks[0], (hidden_size, intermediate_size), jnp.float32) * 0.02
    b1 = jax.random.normal(ks[1], (intermediate_size,), jnp.float32) * 0.02
    # AlbertOutput.dense : Linear(intermediate -> hidden)
    w2 = jax.random.normal(ks[2], (intermediate_size, hidden_size), jnp.float32) * 0.02
    b2 = jax.random.normal(ks[3], (hidden_size,), jnp.float32) * 0.02

    hidden_states = jax.random.normal(ks[4], (B, S, hidden_size), jnp.float32)

    # 1) Resident-weights path (auto-selected for these sizes), f32.
    out = albert_intermediate(hidden_states, w1, b1, w2, b2)
    out = jax.block_until_ready(out)
    ref = _reference(hidden_states, w1, b1, w2, b2)
    assert out.shape == (B, S, hidden_size)
    np.testing.assert_allclose(np.asarray(out), np.asarray(ref), rtol=1e-4, atol=1e-4)

    # 2) Streaming fallback path (forced), multiple I chunks, f32.
    I2 = 256
    w1b = jax.random.normal(ks[5], (hidden_size, I2), jnp.float32) * 0.02
    b1b = jax.random.normal(ks[6], (I2,), jnp.float32) * 0.02
    w2b = jax.random.normal(ks[7], (I2, hidden_size), jnp.float32) * 0.02
    out_s = albert_intermediate(hidden_states, w1b, b1b, w2b, b2,
                                weights_resident=False, tm=16, ti=128)
    out_s = jax.block_until_ready(out_s)
    ref_s = _reference(hidden_states, w1b, b1b, w2b, b2)
    np.testing.assert_allclose(np.asarray(out_s), np.asarray(ref_s), rtol=1e-4, atol=1e-4)

    # 3) bf16 sanity pass (resident path, fast MXU dtype), looser tolerance.
    out_bf16 = albert_intermediate(hidden_states.astype(jnp.bfloat16),
                                   w1.astype(jnp.bfloat16), b1.astype(jnp.bfloat16),
                                   w2.astype(jnp.bfloat16), b2.astype(jnp.bfloat16),
                                   out_dtype=jnp.bfloat16)
    out_bf16 = jax.block_until_ready(out_bf16)
    np.testing.assert_allclose(np.asarray(out_bf16, dtype=np.float32),
                               np.asarray(ref), rtol=5e-2, atol=5e-2)

    print("KERNEL_OK")
</pallas_src>

<mosaic_0001>
module attributes {stable_mosaic.version = 11 : i64} {
  func.func @_ffn_resident_kernel(%arg0: i32, %arg1: memref<16x32xf32, #tpu.memory_space<vmem>>, %arg2: memref<32x64xf32, #tpu.memory_space<vmem>>, %arg3: memref<1x64xf32, #tpu.memory_space<vmem>>, %arg4: memref<64x32xf32, #tpu.memory_space<vmem>>, %arg5: memref<1x32xf32, #tpu.memory_space<vmem>>, %arg6: memref<16x32xf32, #tpu.memory_space<vmem>>) attributes {dimension_semantics = [#tpu.dimension_semantics<parallel>], iteration_bounds = array<i64: 1>, scalar_prefetch = 0 : i64, scratch_operands = 0 : i64, tpu.core_type = #tpu.core_type<tc>, window_params = [{transform_indices = @transform_0, window_bounds = array<i64: 16, 32>}, {pipeline_mode = #tpu.pipeline_mode<synchronous>, transform_indices = @transform_1, window_bounds = array<i64: 32, 64>}, {pipeline_mode = #tpu.pipeline_mode<synchronous>, transform_indices = @transform_2, window_bounds = array<i64: 1, 64>}, {pipeline_mode = #tpu.pipeline_mode<synchronous>, transform_indices = @transform_3, window_bounds = array<i64: 64, 32>}, {pipeline_mode = #tpu.pipeline_mode<synchronous>, transform_indices = @transform_4, window_bounds = array<i64: 1, 32>}, {transform_indices = @transform_5, window_bounds = array<i64: 16, 32>}]} {
    %c0 = arith.constant 0 : index
    %c0_0 = arith.constant 0 : index
    %0 = vector.load %arg1[%c0, %c0_0] : memref<16x32xf32, #tpu.memory_space<vmem>>, vector<16x32xf32>
    %c0_1 = arith.constant 0 : index
    %c0_2 = arith.constant 0 : index
    %1 = vector.load %arg2[%c0_1, %c0_2] : memref<32x64xf32, #tpu.memory_space<vmem>>, vector<32x64xf32>
    %cst = arith.constant dense<0.000000e+00> : vector<16x64xf32>
    %2 = tpu.matmul %0, %1, %cst {dimension_numbers = #tpu.dot_dimension_numbers<[1], [0], [0], [1], [0, 0, 1, 1], [], []>} : vector<16x32xf32>, vector<32x64xf32>, vector<16x64xf32> -> vector<16x64xf32>
    %c0_3 = arith.constant 0 : index
    %c0_4 = arith.constant 0 : index
    %3 = vector.load %arg3[%c0_3, %c0_4] : memref<1x64xf32, #tpu.memory_space<vmem>>, vector<1x64xf32>
    %4 = vector.broadcast %3 : vector<1x64xf32> to vector<16x64xf32>
    %5 = arith.addf %2, %4 : vector<16x64xf32>
    %cst_5 = arith.constant 5.000000e-01 : f32
    %6 = vector.broadcast %cst_5 : f32 to vector<16x64xf32>
    %7 = arith.mulf %6, %5 : vector<16x64xf32>
    %cst_6 = arith.constant 4.471500e-02 : f32
    %8 = vector.broadcast %cst_6 : f32 to vector<16x64xf32>
    %9 = arith.mulf %8, %5 : vector<16x64xf32>
    %10 = arith.mulf %9, %5 : vector<16x64xf32>
    %11 = arith.mulf %10, %5 : vector<16x64xf32>
    %12 = arith.addf %5, %11 : vector<16x64xf32>
    %cst_7 = arith.constant 0.797884583 : f32
    %13 = vector.broadcast %cst_7 : f32 to vector<16x64xf32>
    %14 = arith.mulf %13, %12 : vector<16x64xf32>
    %15 = math.tanh %14 : vector<16x64xf32>
    %cst_8 = arith.constant 1.000000e+00 : f32
    %16 = vector.broadcast %cst_8 : f32 to vector<16x64xf32>
    %17 = arith.addf %16, %15 : vector<16x64xf32>
    %18 = arith.mulf %7, %17 : vector<16x64xf32>
    %c0_9 = arith.constant 0 : index
    %c0_10 = arith.constant 0 : index
    %19 = vector.load %arg4[%c0_9, %c0_10] : memref<64x32xf32, #tpu.memory_space<vmem>>, vector<64x32xf32>
    %cst_11 = arith.constant dense<0.000000e+00> : vector<16x32xf32>
    %20 = tpu.matmul %18, %19, %cst_11 {dimension_numbers = #tpu.dot_dimension_numbers<[1], [0], [0], [1], [0, 0, 1, 1], [], []>} : vector<16x64xf32>, vector<64x32xf32>, vector<16x32xf32> -> vector<16x32xf32>
    %c0_12 = arith.constant 0 : index
    %c0_13 = arith.constant 0 : index
    %21 = vector.load %arg5[%c0_12, %c0_13] : memref<1x32xf32, #tpu.memory_space<vmem>>, vector<1x32xf32>
    %22 = vector.broadcast %21 : vector<1x32xf32> to vector<16x32xf32>
    %23 = arith.addf %20, %22 : vector<16x32xf32>
    %c0_14 = arith.constant 0 : index
    %c0_15 = arith.constant 0 : index
    %24 = vector.load %arg6[%c0_14, %c0_15] : memref<16x32xf32, #tpu.memory_space<vmem>>, vector<16x32xf32>
    tpu.vector_store %arg6[%c0_14, %c0_15], %23 {strides = array<i32>} : memref<16x32xf32, #tpu.memory_space<vmem>>, vector<16x32xf32>,
    return
  }
  func.func @transform_0(%arg0: i32) -> (i32, i32) {
    %c0_i32 = arith.constant 0 : i32
    %c0_i32_0 = arith.constant 0 : i32
    return %arg0, %c0_i32 : i32, i32
  }
  func.func @transform_1(%arg0: i32) -> (i32, i32) {
    %c0_i32 = arith.constant 0 : i32
    %c0_i32_0 = arith.constant 0 : i32
    %c0_i32_1 = arith.constant 0 : i32
    return %c0_i32, %c0_i32_0 : i32, i32
  }
  func.func @transform_2(%arg0: i32) -> (i32, i32) {
    %c0_i32 = arith.constant 0 : i32
    %c0_i32_0 = arith.constant 0 : i32
    %c0_i32_1 = arith.constant 0 : i32
    return %c0_i32, %c0_i32_0 : i32, i32
  }
  func.func @transform_3(%arg0: i32) -> (i32, i32) {
    %c0_i32 = arith.constant 0 : i32
    %c0_i32_0 = arith.constant 0 : i32
    %c0_i32_1 = arith.constant 0 : i32
    return %c0_i32, %c0_i32_0 : i32, i32
  }
  func.func @transform_4(%arg0: i32) -> (i32, i32) {
    %c0_i32 = arith.constant 0 : i32
    %c0_i32_0 = arith.constant 0 : i32
    %c0_i32_1 = arith.constant 0 : i32
    return %c0_i32, %c0_i32_0 : i32, i32
  }
  func.func @transform_5(%arg0: i32) -> (i32, i32) {
    %c0_i32 = arith.constant 0 : i32
    %c0_i32_0 = arith.constant 0 : i32
    return %arg0, %c0_i32 : i32, i32
  }
}

</mosaic_0001>

<bundles_post_ra>
// kernel: tpu_custom_call.1
= control target key start
LH: loop header
LB: loop body
LE: loop exit
PB: predicated region body
PF: predicated region fallthrough
CT: control target
= control target key end

     0   :  { %vm34_vm0 = vcmask 261120   ;;  %s418_s0 = inlined_call_operand.vmem [shape: f32[16,32], index: 0, kind: input, shape index: {}]   ;;  %s419_s1 = inlined_call_operand.vmem [shape: f32[32,64], index: 1, kind: input, shape index: {}]   ;;  %s420_s2 = inlined_call_operand.vmem [shape: f32[1,64], index: 2, kind: input, shape index: {}]   ;;  %s421_s3 = inlined_call_operand.vmem [shape: f32[64,32], index: 3, kind: input, shape index: {}]   ;;  %s422_s4 = inlined_call_operand.vmem [shape: f32[1,32], index: 4, kind: input, shape index: {}]   ;;  %s423_s5 = inlined_call_operand.hbm [shape: f32[16,32], index: 5, kind: output, shape index: {}]  }
   0x1   :  { %v26_v0 = vld [vmem:[%s419_s1 + $0x18] sm:$0xff]  ;;  %v25_v1 = vld [vmem:[%s419_s1 + $0x10] sm:$0xff]  ;;  %v21_v2 = vld [vmem:[%s418_s0] sm:$0xff] }
   0x2   :  { %271 = vmatprep.subr.mxu0 %v26_v0  ;;  %v24_v3 = vld [vmem:[%s419_s1 + $0x8] sm:$0xff]  ;;  %279 = vmatprep.mubr.msk.f32.mxu0 %vm34_vm0, %v21_v2 }
   0x3   :  { %272 = vmatpush3.msra.mxu0 %v26_v0 }
   0x4   :  { %10 = vsyncpa [#allocation3], 0  ;;  %273 = vmatprep.subr.mxu0 %v25_v1  ;;  %v23_v4 = vld [vmem:[%s419_s1] sm:$0xff]  ;;  %v22_v5 = vld [vmem:[%s418_s0 + $0x8] sm:$0xff]  ;;  %vm149_vm1 = vcmask 523264   ;;  %s330_s21 = smov [#allocation2]  }
   0x5   :  { %274 = vmatpush3.msra.mxu0 %v25_v1  ;;  %v141_v6 = vld [vmem:[%s421_s3 + $0x38] sm:$0xff]  ;;  %v140_v7 = vld [vmem:[%s421_s3 + $0x30] sm:$0xff]  ;;  %v139_v8 = vld [vmem:[%s421_s3 + $0x28] sm:$0xff]  ;;  %s238_s22 = sshll.u32 %s330_s21, 4  ;;  %s239_s22 = int_to_ptr.vmem [resolvable:$true] %s238_s22 }
   0x6   :  { %275 = vmatprep.subr.mxu0 %v24_v3  ;;  %282 = vmatprep.subr.mxu1 %v141_v6  ;;  %v138_v9 = vld [vmem:[%s421_s3 + $0x20] sm:$0xff]  ;;  %v137_v10 = vld [vmem:[%s421_s3 + $0x18] sm:$0xff]  ;;  %v136_v11 = vld [vmem:[%s421_s3 + $0x10] sm:$0xff]  ;;  %s308_s23 = scalar_lea.vmem %s239_s22, 256  ;;  %p313_p1 = scmp.lt.s32.totalorder %s239_s22, %s239_s22 }
   0x7   :  { %276 = vmatpush3.msra.mxu0 %v24_v3  ;;  %283 = vmatpush3.msra.mxu1 %v141_v6  ;;  %v135_v12 = vld [vmem:[%s421_s3 + $0x8] sm:$0xff]  ;;  %v134_v13 = vld [vmem:[%s421_s3] sm:$0xff]  ;;  %p309_p0 = scmp.ne.s32.totalorder %s239_s22, %s308_s23  ;;  %p314_p2 = scmp.lt.s32.totalorder %s308_s23, %s308_s23 }
   0x8   :  { %277 = vmatprep.subr.mxu0 %v23_v4  ;;  %284 = vmatprep.subr.mxu1 %v140_v7  ;;  %v249_v14 = vld [vmem:[%s420_s2] ss:$0 sm:$0xff] }
   0x9   :  { %278 = vmatpush3.msra.mxu0 %v23_v4  ;;  %285 = vmatpush3.msra.mxu1 %v140_v7  ;;  %v252_v37 = vld [vmem:[%s422_s4] ss:$0 sm:$0xff]  ;;  %p315_p3 = por %p314_p2, %p313_p1 }
   0xa   :  { %280 = vmatmul.mubr.msk.f32.vlgmr.msra.gmra.mxu0 %vm34_vm0, %v22_v5  ;;  %286 = vmatprep.subr.mxu1 %v139_v8 }
   0xb   :  { %287 = vmatpush3.msra.mxu1 %v139_v8  ;;  %p316_p4 = pnand %p315_p3, %p309_p0 }
   0xc   :  { %288 = vmatprep.subr.mxu1 %v138_v9 }
   0xd   :  { %289 = vmatpush3.msra.mxu1 %v138_v9 }
   0xe   :  { %290 = vmatprep.subr.mxu1 %v137_v10 }
   0xf   :  { %291 = vmatpush3.msra.mxu1 %v137_v10 }
  0x10   :  { %292 = vmatprep.subr.mxu1 %v136_v11 }
  0x11   :  { %293 = vmatpush3.msra.mxu1 %v136_v11 }
  0x12   :  { %294 = vmatprep.subr.mxu1 %v135_v12 }
  0x13   :  { %295 = vmatpush3.msra.mxu1 %v135_v12 }
  0x14   :  { %296 = vmatprep.subr.mxu1 %v134_v13 }
  0x15   :  { %297 = vmatpush3.msra.mxu1 %v134_v13 }
  0xca   :  { %v281_v15 = vpop.f32.mrf.mxu0 }
  0xcb   :  { %v113_v16 = vadd.f32 %v281_v15, %v249_v14 }
  0xcc   :  { %v107_v17 = vpop.f32.mrf.mxu0 }
  0xcd   :  { %v119_v18 = vmul.f32 0.044715, %v113_v16  ;;  %v108_v19 = vadd.f32 %v249_v14, %v107_v17  ;;  %v117_v34 = vmul.f32 0.5, %v113_v16 }
  0xcf   :  { %v121_v20 = vmul.f32 %v119_v18, %v113_v16  ;;  %v118_v21 = vmul.f32 0.044715, %v108_v19  ;;  %v116_v32 = vmul.f32 0.5, %v108_v19 }
  0xd1   :  { %v123_v22 = vmul.f32 %v121_v20, %v113_v16  ;;  %v120_v23 = vmul.f32 %v118_v21, %v108_v19 }
  0xd3   :  { %v125_v24 = vadd.f32 %v123_v22, %v113_v16  ;;  %v122_v25 = vmul.f32 %v120_v23, %v108_v19 }
  0xd5   :  { %v124_v26 = vadd.f32 %v122_v25, %v108_v19  ;;  %v127_v27 = vmul.f32 0.7978846, %v125_v24 }
  0xd7   :  { %v126_v28 = vmul.f32 0.7978846, %v124_v26  ;;  %304 = vtanh.f32 %v127_v27 }
  0xd9   :  { %306 = vtanh.f32 %v126_v28 }
  0xe4   :  { %v305_v29 = vpop.eup %304 }
  0xe5   :  { %v131_v31 = vadd.f32 1.0, %v305_v29 }
  0xe6   :  { %v307_v30 = vpop.eup %306 }
  0xe7   :  { %v130_v33 = vadd.f32 1.0, %v307_v30  ;;  %v133_v36 = vmul.f32 %v131_v31, %v117_v34 }
  0xe9   :  { %v132_v35 = vmul.f32 %v130_v33, %v116_v32 }
  0xeb   :  { %298 = vmatprep.mubr.msk.f32.mxu1 %vm149_vm1, %v132_v35 }
  0xec   :  { %299 = vmatmul.mubr.msk.f32.vlgmr.msra.gmra.mxu1 %vm149_vm1, %v133_v36 }
 0x1ac   :  { %v300_v38 = vpop.f32.mrf.mxu1 }
 0x1ad   :  { %v228_v39 = vadd.f32 %v300_v38, %v252_v37 }
 0x1ae   :  { %v222_v40 = vpop.f32.mrf.mxu1 }
 0x1af   :  { %232 = vst.msk [vmem:[#allocation2 + $0x8] sm:$0xff] %vm34_vm0, %v228_v39  ;;  %v223_v41 = vadd.f32 %v252_v37, %v222_v40 }
 0x1b1   :  { %231 = vst.msk [vmem:[#allocation2] sm:$0xff] %vm34_vm0, %v223_v41 }
 0x1b2   :  { %319 = shalt.err (!%p316_p4)
}
 0x1b3   :  { %s331_s24 = smov 128   ;;  %s332_s4 = smov 8  }
 0x1b4   :  { %244 = dma.vmem_to_hbm [thread:$0]  %s239_s22, 256, %s423_s5, [#allocation3], %s331_s24, %s331_s24, %s332_s4  }
 0x1b5   :  { %328 = dma.done.wait [#allocation3], 256  }
 0x1b6   :  { %329 = vsyncadd [#allocation3], 4294967040 }
 0x1b7   :  { %248 = vsyncpa [#allocation3], 1 }

</bundles_post_ra>
